<compile_context>
chip_gen: v7x
topology: tpu7x:2x2x1
jax: 0.10.0
libtpu: 0.0.40
codegen_flags: <defaults>
</compile_context>

<pallas_src>
import functools
import math

import jax
import jax.numpy as jnp
from jax import lax
from jax.experimental import pallas as pl
from jax.experimental.pallas import tpu as pltpu


# ----------------------------------------------------------------------------
# Pallas kernel
# ----------------------------------------------------------------------------
def _encoder_block_kernel(
    x_ref, mask_ref,
    wqkv_ref, bqkv_ref, wo_ref, bo_ref,
    g1_ref, be1_ref,
    w1_ref, bf1_ref, w2_ref, bf2_ref,
    g2_ref, be2_ref,
    o_ref,
    *, num_heads: int, d_queries: int, d_values: int, compute_dtype,
):
    f32 = jnp.float32
    cdt = compute_dtype

    tb, s, d = x_ref.shape
    rows = tb * s
    hq = num_heads * d_queries
    hv = num_heads * d_values

    x = x_ref[...].astype(f32)                    # (TB, S, D)
    x2d = x.reshape(rows, d)                      # (TB*S, D)

    # Additive key-padding mask, computed ONCE (hoisted out of the head loop):
    # 0.0 for real tokens, -1e9 for padding. Broadcasts over query positions.
    mask_add = (mask_ref[...].astype(f32) - 1.0) * 1e9        # (TB, 1, S)

    # ---- fused QKV projection ------------------------------------------------
    xc = x2d.astype(cdt)
    qkv = jnp.dot(xc, wqkv_ref[...], preferred_element_type=f32) + bqkv_ref[...]
    scale = 1.0 / math.sqrt(d_queries)
    q = (qkv[:, :hq] * scale).reshape(tb, s, hq).astype(cdt)   # pre-scaled queries
    k = qkv[:, hq:2 * hq].reshape(tb, s, hq).astype(cdt)
    v = qkv[:, 2 * hq:].reshape(tb, s, hv).astype(cdt)

    wo = wo_ref[...]                              # (Hv, D), compute dtype
    # Accumulate the output projection head-by-head (no lane-narrow concat).
    attn = jnp.broadcast_to(bo_ref[...].astype(f32), (rows, d))

    for h in range(num_heads):                    # static, fully unrolled
        qh = q[:, :, h * d_queries:(h + 1) * d_queries]        # (TB, S, dq)
        kh = k[:, :, h * d_queries:(h + 1) * d_queries]        # (TB, S, dq)
        vh = v[:, :, h * d_values:(h + 1) * d_values]          # (TB, S, dv)

        # Batched QK^T contracting the last dims directly (no kh.T relayout).
        scores = jnp.einsum("bqd,bkd->bqk", qh, kh,
                            preferred_element_type=f32) + mask_add   # (TB, S, S)
        scores = scores - jnp.max(scores, axis=-1, keepdims=True)
        p = jnp.exp(scores)                                          # EUP
        p = p * pl.reciprocal(jnp.sum(p, axis=-1, keepdims=True), approx=True)

        ctx = jnp.einsum("bqk,bkd->bqd", p.astype(cdt), vh,
                         preferred_element_type=f32)                 # (TB, S, dv)
        attn = attn + jnp.dot(
            ctx.reshape(rows, d_values).astype(cdt),
            wo[h * d_values:(h + 1) * d_values, :],
            preferred_element_type=f32)

    # dropout_1 -> identity (inference)
    y = attn + x2d

    # ---- LayerNorm 1 ----------------------------------------------------------
    mu = jnp.mean(y, axis=-1, keepdims=True)
    var = jnp.mean((y - mu) ** 2, axis=-1, keepdims=True)
    y = (y - mu) * lax.rsqrt(var + 1e-5) * g1_ref[...] + be1_ref[...]

    # ---- position-wise feed-forward -------------------------------------------
    h1 = jnp.dot(y.astype(cdt), w1_ref[...], preferred_element_type=f32) + bf1_ref[...]
    h1 = jnp.maximum(h1, 0.0)
    z = jnp.dot(h1.astype(cdt), w2_ref[...], preferred_element_type=f32) + bf2_ref[...]

    # dropout_2 -> identity (inference)
    z = z + y

    # ---- LayerNorm 2 ----------------------------------------------------------
    mu2 = jnp.mean(z, axis=-1, keepdims=True)
    var2 = jnp.mean((z - mu2) ** 2, axis=-1, keepdims=True)
    out = (z - mu2) * lax.rsqrt(var2 + 1e-5) * g2_ref[...] + be2_ref[...]

    o_ref[...] = out.reshape(tb, s, d).astype(o_ref.dtype)


# ----------------------------------------------------------------------------
# Wrapper
# ----------------------------------------------------------------------------
def _full_spec(arr):
    nd = arr.ndim
    return pl.BlockSpec(arr.shape, lambda i, _nd=nd: (0,) * _nd)


def encoder_block(x, padding_mask, params, *, num_heads, d_queries, d_values,
                  compute_dtype=jnp.bfloat16, rows_target=128):
    """x: (B, S, D) float32, padding_mask: (B, S) float32 (1=token, 0=pad)."""
    B, S, D = x.shape
    mask3 = padding_mask.reshape(B, 1, S).astype(jnp.float32)

    # Batch-tiling: process TB batch elements per grid step so each
    # projection / FFN matmul sees up to ~rows_target rows.
    tb = 1
    for cand in range(1, B + 1):
        if B % cand == 0 and cand * S <= max(S, rows_target):
            tb = cand
    grid = (B // tb,)

    cdt = compute_dtype
    # Fused QKV weight / bias. Matmul weights are shipped in the compute dtype
    # (bf16 on v6e/v7x -> half the weight DMA + VMEM, MXU bf16 peak); small
    # bias / LayerNorm parameters stay f32.
    wqkv = jnp.concatenate([params["wq"], params["wk"], params["wv"]], axis=1).astype(cdt)
    bqkv = jnp.concatenate([params["bq"], params["bk"], params["bv"]], axis=1).astype(jnp.float32)
    weights = [
        wqkv, bqkv,
        params["wo"].astype(cdt), params["bo"].astype(jnp.float32),
        params["g1"].astype(jnp.float32), params["be1"].astype(jnp.float32),
        params["w1"].astype(cdt), params["bf1"].astype(jnp.float32),
        params["w2"].astype(cdt), params["bf2"].astype(jnp.float32),
        params["g2"].astype(jnp.float32), params["be2"].astype(jnp.float32),
    ]

    # NOTE: weight index_maps are constant across the grid, so Mosaic keeps a
    # single resident copy (no per-step re-DMA needed).
    in_specs = (
        [pl.BlockSpec((tb, S, D), lambda i: (i, 0, 0)),   # x
         pl.BlockSpec((tb, 1, S), lambda i: (i, 0, 0))]   # key-padding mask
        + [_full_spec(w) for w in weights]
    )

    kernel = functools.partial(
        _encoder_block_kernel,
        num_heads=num_heads, d_queries=d_queries, d_values=d_values,
        compute_dtype=cdt,
    )

    # Explicit VMEM budget: double-buffered I/O tiles + resident weights +
    # per-head score tile + headroom, clamped to 64 MiB so it also fits v7x.
    f32_b = 4
    tile_bytes = (tb * S * D + tb * S + tb * S * D) * f32_b
    weight_bytes = sum(int(w.size) * jnp.dtype(w.dtype).itemsize for w in weights)
    score_bytes = tb * S * S * f32_b
    vmem_limit = int(min(64 << 20,
                         max(32 << 20,
                             4 * (2 * tile_bytes + weight_bytes + score_bytes))))

    return pl.pallas_call(
        kernel,
        out_shape=jax.ShapeDtypeStruct((B, S, D), jnp.float32),
        grid_spec=pltpu.PrefetchScalarGridSpec(
            num_scalar_prefetch=0,
            grid=grid,
            in_specs=in_specs,
            out_specs=pl.BlockSpec((tb, S, D), lambda i: (i, 0, 0)),
        ),
        compiler_params=pltpu.CompilerParams(
            dimension_semantics=("parallel",),
            vmem_limit_bytes=vmem_limit),
    )(x, mask3, *weights)


# ----------------------------------------------------------------------------
# Pure-JAX reference for validation
# ----------------------------------------------------------------------------
def encoder_block_ref(x, padding_mask, p, *, num_heads, d_queries, d_values):
    B, S, D = x.shape
    q = x @ p["wq"] + p["bq"]
    k = x @ p["wk"] + p["bk"]
    v = x @ p["wv"] + p["bv"]
    q = q.reshape(B, S, num_heads, d_queries).transpose(0, 2, 1, 3)
    k = k.reshape(B, S, num_heads, d_queries).transpose(0, 2, 1, 3)
    v = v.reshape(B, S, num_heads, d_values).transpose(0, 2, 1, 3)
    scores = jnp.einsum("bhqd,bhkd->bhqk", q, k) / math.sqrt(d_queries)
    m = padding_mask[:, None, None, :] > 0.5
    scores = jnp.where(m, scores, -1e9)
    pattn = jax.nn.softmax(scores, axis=-1)
    ctx = jnp.einsum("bhqk,bhkd->bhqd", pattn, v)
    ctx = ctx.transpose(0, 2, 1, 3).reshape(B, S, num_heads * d_values)
    attn_out = ctx @ p["wo"] + p["bo"]
    y = attn_out + x

    def ln(t, g, b):
        mu = t.mean(-1, keepdims=True)
        var = ((t - mu) ** 2).mean(-1, keepdims=True)
        return (t - mu) * jax.lax.rsqrt(var + 1e-5) * g + b

    y = ln(y, p["g1"], p["be1"])
    h1 = jnp.maximum(y @ p["w1"] + p["bf1"], 0.0)
    z = h1 @ p["w2"] + p["bf2"] + y
    return ln(z, p["g2"], p["be2"])


# ----------------------------------------------------------------------------
# Main
# ----------------------------------------------------------------------------
if __name__ == "__main__":
    # small shapes consistent with the module
    B, S = 2, 8
    d_model, num_heads = 32, 4
    d_queries, d_values = 16, 16
    d_hidden = 64

    key = jax.random.PRNGKey(0)
    ks = jax.random.split(key, 16)

    def init(k, shape, scale=0.05):
        return (scale * jax.random.normal(k, shape)).astype(jnp.float32)

    params = {
        "wq": init(ks[0], (d_model, num_heads * d_queries)),
        "bq": init(ks[1], (1, num_heads * d_queries)),
        "wk": init(ks[2], (d_model, num_heads * d_queries)),
        "bk": init(ks[3], (1, num_heads * d_queries)),
        "wv": init(ks[4], (d_model, num_heads * d_values)),
        "bv": init(ks[5], (1, num_heads * d_values)),
        "wo": init(ks[6], (num_heads * d_values, d_model)),
        "bo": init(ks[7], (1, d_model)),
        "g1": jnp.ones((1, d_model), jnp.float32),
        "be1": jnp.zeros((1, d_model), jnp.float32),
        "w1": init(ks[8], (d_model, d_hidden)),
        "bf1": init(ks[9], (1, d_hidden)),
        "w2": init(ks[10], (d_hidden, d_model)),
        "bf2": init(ks[11], (1, d_model)),
        "g2": jnp.ones((1, d_model), jnp.float32),
        "be2": jnp.zeros((1, d_model), jnp.float32),
    }

    x = jax.random.normal(ks[12], (B, S, d_model), dtype=jnp.float32)
    # last two positions of second sequence are padding
    padding_mask = jnp.ones((B, S), jnp.float32).at[1, -2:].set(0.0)

    ref = encoder_block_ref(x, padding_mask, params,
                            num_heads=num_heads, d_queries=d_queries,
                            d_values=d_values)

    # f32-matmul path (v5e-friendly): tight correctness check
    out_f32 = jax.block_until_ready(
        encoder_block(x, padding_mask, params,
                      num_heads=num_heads, d_queries=d_queries,
                      d_values=d_values, compute_dtype=jnp.float32))
    assert out_f32.shape == (B, S, d_model)
    assert jnp.allclose(out_f32, ref, atol=2e-3, rtol=2e-3), \
        f"f32 max abs err {jnp.max(jnp.abs(out_f32 - ref))}"

    # bf16-matmul path (v6e/v7x MXU peak, f32 accumulation): looser check
    out_bf16 = jax.block_until_ready(
        encoder_block(x, padding_mask, params,
                      num_heads=num_heads, d_queries=d_queries,
                      d_values=d_values, compute_dtype=jnp.bfloat16))
    assert out_bf16.shape == (B, S, d_model)
    assert jnp.allclose(out_bf16, ref, atol=3e-2, rtol=3e-2), \
        f"bf16 max abs err {jnp.max(jnp.abs(out_bf16 - ref))}"

    print("KERNEL_OK")
</pallas_src>

<mosaic_0001>
module attributes {stable_mosaic.version = 11 : i64} {
  func.func @_encoder_block_kernel(%arg0: i32, %arg1: memref<2x8x32xf32, #tpu.memory_space<vmem>>, %arg2: memref<2x1x8xf32, #tpu.memory_space<vmem>>, %arg3: memref<32x192xf32, #tpu.memory_space<vmem>>, %arg4: memref<1x192xf32, #tpu.memory_space<vmem>>, %arg5: memref<64x32xf32, #tpu.memory_space<vmem>>, %arg6: memref<1x32xf32, #tpu.memory_space<vmem>>, %arg7: memref<1x32xf32, #tpu.memory_space<vmem>>, %arg8: memref<1x32xf32, #tpu.memory_space<vmem>>, %arg9: memref<32x64xf32, #tpu.memory_space<vmem>>, %arg10: memref<1x64xf32, #tpu.memory_space<vmem>>, %arg11: memref<64x32xf32, #tpu.memory_space<vmem>>, %arg12: memref<1x32xf32, #tpu.memory_space<vmem>>, %arg13: memref<1x32xf32, #tpu.memory_space<vmem>>, %arg14: memref<1x32xf32, #tpu.memory_space<vmem>>, %arg15: memref<2x8x32xf32, #tpu.memory_space<vmem>>) attributes {dimension_semantics = [#tpu.dimension_semantics<parallel>], iteration_bounds = array<i64: 1>, scalar_prefetch = 0 : i64, scratch_operands = 0 : i64, tpu.core_type = #tpu.core_type<tc>, window_params = [{transform_indices = @transform_0, window_bounds = array<i64: 2, 8, 32>}, {transform_indices = @transform_1, window_bounds = array<i64: 2, 1, 8>}, {pipeline_mode = #tpu.pipeline_mode<synchronous>, transform_indices = @transform_2, window_bounds = array<i64: 32, 192>}, {pipeline_mode = #tpu.pipeline_mode<synchronous>, transform_indices = @transform_3, window_bounds = array<i64: 1, 192>}, {pipeline_mode = #tpu.pipeline_mode<synchronous>, transform_indices = @transform_4, window_bounds = array<i64: 64, 32>}, {pipeline_mode = #tpu.pipeline_mode<synchronous>, transform_indices = @transform_5, window_bounds = array<i64: 1, 32>}, {pipeline_mode = #tpu.pipeline_mode<synchronous>, transform_indices = @transform_6, window_bounds = array<i64: 1, 32>}, {pipeline_mode = #tpu.pipeline_mode<synchronous>, transform_indices = @transform_7, window_bounds = array<i64: 1, 32>}, {pipeline_mode = #tpu.pipeline_mode<synchronous>, transform_indices = @transform_8, window_bounds = array<i64: 32, 64>}, {pipeline_mode = #tpu.pipeline_mode<synchronous>, transform_indices = @transform_9, window_bounds = array<i64: 1, 64>}, {pipeline_mode = #tpu.pipeline_mode<synchronous>, transform_indices = @transform_10, window_bounds = array<i64: 64, 32>}, {pipeline_mode = #tpu.pipeline_mode<synchronous>, transform_indices = @transform_11, window_bounds = array<i64: 1, 32>}, {pipeline_mode = #tpu.pipeline_mode<synchronous>, transform_indices = @transform_12, window_bounds = array<i64: 1, 32>}, {pipeline_mode = #tpu.pipeline_mode<synchronous>, transform_indices = @transform_13, window_bounds = array<i64: 1, 32>}, {transform_indices = @transform_14, window_bounds = array<i64: 2, 8, 32>}]} {
    %c0 = arith.constant 0 : index
    %c0_0 = arith.constant 0 : index
    %c0_1 = arith.constant 0 : index
    %0 = vector.load %arg1[%c0, %c0_0, %c0_1] : memref<2x8x32xf32, #tpu.memory_space<vmem>>, vector<2x8x32xf32>
    %1 = vector.shape_cast %0 : vector<2x8x32xf32> to vector<16x32xf32>
    %c0_2 = arith.constant 0 : index
    %c0_3 = arith.constant 0 : index
    %c0_4 = arith.constant 0 : index
    %2 = vector.load %arg2[%c0_2, %c0_3, %c0_4] : memref<2x1x8xf32, #tpu.memory_space<vmem>>, vector<2x1x8xf32>
    %cst = arith.constant 1.000000e+00 : f32
    %3 = vector.broadcast %cst : f32 to vector<2x1x8xf32>
    %4 = arith.subf %2, %3 : vector<2x1x8xf32>
    %cst_5 = arith.constant 1.000000e+09 : f32
    %5 = vector.broadcast %cst_5 : f32 to vector<2x1x8xf32>
    %6 = arith.mulf %4, %5 : vector<2x1x8xf32>
    %c0_6 = arith.constant 0 : index
    %c0_7 = arith.constant 0 : index
    %7 = vector.load %arg3[%c0_6, %c0_7] : memref<32x192xf32, #tpu.memory_space<vmem>>, vector<32x192xf32>
    %cst_8 = arith.constant dense<0.000000e+00> : vector<16x192xf32>
    %8 = tpu.matmul %1, %7, %cst_8 {dimension_numbers = #tpu.dot_dimension_numbers<[1], [0], [0], [1], [0, 0, 1, 1], [], []>} : vector<16x32xf32>, vector<32x192xf32>, vector<16x192xf32> -> vector<16x192xf32>
    %c0_9 = arith.constant 0 : index
    %c0_10 = arith.constant 0 : index
    %9 = vector.load %arg4[%c0_9, %c0_10] : memref<1x192xf32, #tpu.memory_space<vmem>>, vector<1x192xf32>
    %10 = vector.broadcast %9 : vector<1x192xf32> to vector<16x192xf32>
    %11 = arith.addf %8, %10 : vector<16x192xf32>
    %12 = vector.extract_strided_slice %11 {offsets = [0, 0], sizes = [16, 64], strides = [1, 1]} : vector<16x192xf32> to vector<16x64xf32>
    %cst_11 = arith.constant 2.500000e-01 : f32
    %13 = vector.broadcast %cst_11 : f32 to vector<16x64xf32>
    %14 = arith.mulf %12, %13 : vector<16x64xf32>
    %15 = vector.shape_cast %14 : vector<16x64xf32> to vector<2x8x64xf32>
    %16 = vector.extract_strided_slice %11 {offsets = [0, 64], sizes = [16, 64], strides = [1, 1]} : vector<16x192xf32> to vector<16x64xf32>
    %17 = vector.shape_cast %16 : vector<16x64xf32> to vector<2x8x64xf32>
    %18 = vector.extract_strided_slice %11 {offsets = [0, 128], sizes = [16, 64], strides = [1, 1]} : vector<16x192xf32> to vector<16x64xf32>
    %19 = vector.shape_cast %18 : vector<16x64xf32> to vector<2x8x64xf32>
    %c0_12 = arith.constant 0 : index
    %c0_13 = arith.constant 0 : index
    %20 = vector.load %arg5[%c0_12, %c0_13] : memref<64x32xf32, #tpu.memory_space<vmem>>, vector<64x32xf32>
    %c0_14 = arith.constant 0 : index
    %c0_15 = arith.constant 0 : index
    %21 = vector.load %arg6[%c0_14, %c0_15] : memref<1x32xf32, #tpu.memory_space<vmem>>, vector<1x32xf32>
    %22 = vector.shape_cast %21 : vector<1x32xf32> to vector<1x32xf32>
    %23 = vector.broadcast %22 : vector<1x32xf32> to vector<16x32xf32>
    %24 = vector.extract_strided_slice %15 {offsets = [0, 0, 0], sizes = [2, 8, 16], strides = [1, 1, 1]} : vector<2x8x64xf32> to vector<2x8x16xf32>
    %25 = vector.extract_strided_slice %17 {offsets = [0, 0, 0], sizes = [2, 8, 16], strides = [1, 1, 1]} : vector<2x8x64xf32> to vector<2x8x16xf32>
    %26 = vector.extract_strided_slice %19 {offsets = [0, 0, 0], sizes = [2, 8, 16], strides = [1, 1, 1]} : vector<2x8x64xf32> to vector<2x8x16xf32>
    "tpu.trace_start"() <{level = 10 : i32, message = "bqd,bkd->bqk"}> : () -> ()
    %cst_16 = arith.constant dense<0.000000e+00> : vector<2x8x8xf32>
    %27 = tpu.matmul %24, %25, %cst_16 {dimension_numbers = #tpu.dot_dimension_numbers<[2], [2], [1], [1], [0, 0, 0, 1, 1, 1], [0], [0]>} : vector<2x8x16xf32>, vector<2x8x16xf32>, vector<2x8x8xf32> -> vector<2x8x8xf32>
    "tpu.trace_stop"() : () -> ()
    %28 = vector.broadcast %6 : vector<2x1x8xf32> to vector<2x8x8xf32>
    %29 = arith.addf %27, %28 : vector<2x8x8xf32>
    %cst_17 = arith.constant dense<0xFF800000> : vector<2x8xf32>
    %30 = vector.multi_reduction <maximumf>, %29, %cst_17 [2] : vector<2x8x8xf32> to vector<2x8xf32>
    %31 = vector.shape_cast %30 : vector<2x8xf32> to vector<2x8x1xf32>
    %32 = vector.broadcast %31 : vector<2x8x1xf32> to vector<2x8x8xf32>
    %33 = arith.subf %29, %32 : vector<2x8x8xf32>
    %34 = math.exp %33 : vector<2x8x8xf32>
    %cst_18 = arith.constant dense<0.000000e+00> : vector<2x8xf32>
    %35 = vector.multi_reduction <add>, %34, %cst_18 [2] : vector<2x8x8xf32> to vector<2x8xf32>
    %36 = vector.shape_cast %35 : vector<2x8xf32> to vector<2x8x1xf32>
    %37 = tpu.reciprocal %36 {approx = true} : vector<2x8x1xf32> -> vector<2x8x1xf32>
    %38 = vector.broadcast %37 : vector<2x8x1xf32> to vector<2x8x8xf32>
    %39 = arith.mulf %34, %38 : vector<2x8x8xf32>
    "tpu.trace_start"() <{level = 10 : i32, message = "bqk,bkd->bqd"}> : () -> ()
    %cst_19 = arith.constant dense<0.000000e+00> : vector<2x8x16xf32>
    %40 = tpu.matmul %39, %26, %cst_19 {dimension_numbers = #tpu.dot_dimension_numbers<[2], [1], [1], [2], [0, 0, 0, 1, 1, 2], [0], [0]>} : vector<2x8x8xf32>, vector<2x8x16xf32>, vector<2x8x16xf32> -> vector<2x8x16xf32>
    "tpu.trace_stop"() : () -> ()
    %41 = vector.shape_cast %40 : vector<2x8x16xf32> to vector<16x16xf32>
    %42 = vector.extract_strided_slice %20 {offsets = [0, 0], sizes = [16, 32], strides = [1, 1]} : vector<64x32xf32> to vector<16x32xf32>
    %cst_20 = arith.constant dense<0.000000e+00> : vector<16x32xf32>
    %43 = tpu.matmul %41, %42, %cst_20 {dimension_numbers = #tpu.dot_dimension_numbers<[1], [0], [0], [1], [0, 0, 1, 1], [], []>} : vector<16x16xf32>, vector<16x32xf32>, vector<16x32xf32> -> vector<16x32xf32>
    %44 = arith.addf %23, %43 : vector<16x32xf32>
    %45 = vector.extract_strided_slice %15 {offsets = [0, 0, 16], sizes = [2, 8, 16], strides = [1, 1, 1]} : vector<2x8x64xf32> to vector<2x8x16xf32>
    %46 = vector.extract_strided_slice %17 {offsets = [0, 0, 16], sizes = [2, 8, 16], strides = [1, 1, 1]} : vector<2x8x64xf32> to vector<2x8x16xf32>
    %47 = vector.extract_strided_slice %19 {offsets = [0, 0, 16], sizes = [2, 8, 16], strides = [1, 1, 1]} : vector<2x8x64xf32> to vector<2x8x16xf32>
    "tpu.trace_start"() <{level = 10 : i32, message = "bqd,bkd->bqk"}> : () -> ()
    %cst_21 = arith.constant dense<0.000000e+00> : vector<2x8x8xf32>
    %48 = tpu.matmul %45, %46, %cst_21 {dimension_numbers = #tpu.dot_dimension_numbers<[2], [2], [1], [1], [0, 0, 0, 1, 1, 1], [0], [0]>} : vector<2x8x16xf32>, vector<2x8x16xf32>, vector<2x8x8xf32> -> vector<2x8x8xf32>
    "tpu.trace_stop"() : () -> ()
    %49 = vector.broadcast %6 : vector<2x1x8xf32> to vector<2x8x8xf32>
    %50 = arith.addf %48, %49 : vector<2x8x8xf32>
    %cst_22 = arith.constant dense<0xFF800000> : vector<2x8xf32>
    %51 = vector.multi_reduction <maximumf>, %50, %cst_22 [2] : vector<2x8x8xf32> to vector<2x8xf32>
    %52 = vector.shape_cast %51 : vector<2x8xf32> to vector<2x8x1xf32>
    %53 = vector.broadcast %52 : vector<2x8x1xf32> to vector<2x8x8xf32>
    %54 = arith.subf %50, %53 : vector<2x8x8xf32>
    %55 = math.exp %54 : vector<2x8x8xf32>
    %cst_23 = arith.constant dense<0.000000e+00> : vector<2x8xf32>
    %56 = vector.multi_reduction <add>, %55, %cst_23 [2] : vector<2x8x8xf32> to vector<2x8xf32>
    %57 = vector.shape_cast %56 : vector<2x8xf32> to vector<2x8x1xf32>
    %58 = tpu.reciprocal %57 {approx = true} : vector<2x8x1xf32> -> vector<2x8x1xf32>
    %59 = vector.broadcast %58 : vector<2x8x1xf32> to vector<2x8x8xf32>
    %60 = arith.mulf %55, %59 : vector<2x8x8xf32>
    "tpu.trace_start"() <{level = 10 : i32, message = "bqk,bkd->bqd"}> : () -> ()
    %cst_24 = arith.constant dense<0.000000e+00> : vector<2x8x16xf32>
    %61 = tpu.matmul %60, %47, %cst_24 {dimension_numbers = #tpu.dot_dimension_numbers<[2], [1], [1], [2], [0, 0, 0, 1, 1, 2], [0], [0]>} : vector<2x8x8xf32>, vector<2x8x16xf32>, vector<2x8x16xf32> -> vector<2x8x16xf32>
    "tpu.trace_stop"() : () -> ()
    %62 = vector.shape_cast %61 : vector<2x8x16xf32> to vector<16x16xf32>
    %63 = vector.extract_strided_slice %20 {offsets = [16, 0], sizes = [16, 32], strides = [1, 1]} : vector<64x32xf32> to vector<16x32xf32>
    %cst_25 = arith.constant dense<0.000000e+00> : vector<16x32xf32>
    %64 = tpu.matmul %62, %63, %cst_25 {dimension_numbers = #tpu.dot_dimension_numbers<[1], [0], [0], [1], [0, 0, 1, 1], [], []>} : vector<16x16xf32>, vector<16x32xf32>, vector<16x32xf32> -> vector<16x32xf32>
    %65 = arith.addf %44, %64 : vector<16x32xf32>
    %66 = vector.extract_strided_slice %15 {offsets = [0, 0, 32], sizes = [2, 8, 16], strides = [1, 1, 1]} : vector<2x8x64xf32> to vector<2x8x16xf32>
    %67 = vector.extract_strided_slice %17 {offsets = [0, 0, 32], sizes = [2, 8, 16], strides = [1, 1, 1]} : vector<2x8x64xf32> to vector<2x8x16xf32>
    %68 = vector.extract_strided_slice %19 {offsets = [0, 0, 32], sizes = [2, 8, 16], strides = [1, 1, 1]} : vector<2x8x64xf32> to vector<2x8x16xf32>
    "tpu.trace_start"() <{level = 10 : i32, message = "bqd,bkd->bqk"}> : () -> ()
    %cst_26 = arith.constant dense<0.000000e+00> : vector<2x8x8xf32>
    %69 = tpu.matmul %66, %67, %cst_26 {dimension_numbers = #tpu.dot_dimension_numbers<[2], [2], [1], [1], [0, 0, 0, 1, 1, 1], [0], [0]>} : vector<2x8x16xf32>, vector<2x8x16xf32>, vector<2x8x8xf32> -> vector<2x8x8xf32>
    "tpu.trace_stop"() : () -> ()
    %70 = vector.broadcast %6 : vector<2x1x8xf32> to vector<2x8x8xf32>
    %71 = arith.addf %69, %70 : vector<2x8x8xf32>
    %cst_27 = arith.constant dense<0xFF800000> : vector<2x8xf32>
    %72 = vector.multi_reduction <maximumf>, %71, %cst_27 [2] : vector<2x8x8xf32> to vector<2x8xf32>
    %73 = vector.shape_cast %72 : vector<2x8xf32> to vector<2x8x1xf32>
    %74 = vector.broadcast %73 : vector<2x8x1xf32> to vector<2x8x8xf32>
    %75 = arith.subf %71, %74 : vector<2x8x8xf32>
    %76 = math.exp %75 : vector<2x8x8xf32>
    %cst_28 = arith.constant dense<0.000000e+00> : vector<2x8xf32>
    %77 = vector.multi_reduction <add>, %76, %cst_28 [2] : vector<2x8x8xf32> to vector<2x8xf32>
    %78 = vector.shape_cast %77 : vector<2x8xf32> to vector<2x8x1xf32>
    %79 = tpu.reciprocal %78 {approx = true} : vector<2x8x1xf32> -> vector<2x8x1xf32>
    %80 = vector.broadcast %79 : vector<2x8x1xf32> to vector<2x8x8xf32>
    %81 = arith.mulf %76, %80 : vector<2x8x8xf32>
    "tpu.trace_start"() <{level = 10 : i32, message = "bqk,bkd->bqd"}> : () -> ()
    %cst_29 = arith.constant dense<0.000000e+00> : vector<2x8x16xf32>
    %82 = tpu.matmul %81, %68, %cst_29 {dimension_numbers = #tpu.dot_dimension_numbers<[2], [1], [1], [2], [0, 0, 0, 1, 1, 2], [0], [0]>} : vector<2x8x8xf32>, vector<2x8x16xf32>, vector<2x8x16xf32> -> vector<2x8x16xf32>
    "tpu.trace_stop"() : () -> ()
    %83 = vector.shape_cast %82 : vector<2x8x16xf32> to vector<16x16xf32>
    %84 = vector.extract_strided_slice %20 {offsets = [32, 0], sizes = [16, 32], strides = [1, 1]} : vector<64x32xf32> to vector<16x32xf32>
    %cst_30 = arith.constant dense<0.000000e+00> : vector<16x32xf32>
    %85 = tpu.matmul %83, %84, %cst_30 {dimension_numbers = #tpu.dot_dimension_numbers<[1], [0], [0], [1], [0, 0, 1, 1], [], []>} : vector<16x16xf32>, vector<16x32xf32>, vector<16x32xf32> -> vector<16x32xf32>
    %86 = arith.addf %65, %85 : vector<16x32xf32>
    %87 = vector.extract_strided_slice %15 {offsets = [0, 0, 48], sizes = [2, 8, 16], strides = [1, 1, 1]} : vector<2x8x64xf32> to vector<2x8x16xf32>
    %88 = vector.extract_strided_slice %17 {offsets = [0, 0, 48], sizes = [2, 8, 16], strides = [1, 1, 1]} : vector<2x8x64xf32> to vector<2x8x16xf32>
    %89 = vector.extract_strided_slice %19 {offsets = [0, 0, 48], sizes = [2, 8, 16], strides = [1, 1, 1]} : vector<2x8x64xf32> to vector<2x8x16xf32>
    "tpu.trace_start"() <{level = 10 : i32, message = "bqd,bkd->bqk"}> : () -> ()
    %cst_31 = arith.constant dense<0.000000e+00> : vector<2x8x8xf32>
    %90 = tpu.matmul %87, %88, %cst_31 {dimension_numbers = #tpu.dot_dimension_numbers<[2], [2], [1], [1], [0, 0, 0, 1, 1, 1], [0], [0]>} : vector<2x8x16xf32>, vector<2x8x16xf32>, vector<2x8x8xf32> -> vector<2x8x8xf32>
    "tpu.trace_stop"() : () -> ()
    %91 = vector.broadcast %6 : vector<2x1x8xf32> to vector<2x8x8xf32>
    %92 = arith.addf %90, %91 : vector<2x8x8xf32>
    %cst_32 = arith.constant dense<0xFF800000> : vector<2x8xf32>
    %93 = vector.multi_reduction <maximumf>, %92, %cst_32 [2] : vector<2x8x8xf32> to vector<2x8xf32>
    %94 = vector.shape_cast %93 : vector<2x8xf32> to vector<2x8x1xf32>
    %95 = vector.broadcast %94 : vector<2x8x1xf32> to vector<2x8x8xf32>
    %96 = arith.subf %92, %95 : vector<2x8x8xf32>
    %97 = math.exp %96 : vector<2x8x8xf32>
    %cst_33 = arith.constant dense<0.000000e+00> : vector<2x8xf32>
    %98 = vector.multi_reduction <add>, %97, %cst_33 [2] : vector<2x8x8xf32> to vector<2x8xf32>
    %99 = vector.shape_cast %98 : vector<2x8xf32> to vector<2x8x1xf32>
    %100 = tpu.reciprocal %99 {approx = true} : vector<2x8x1xf32> -> vector<2x8x1xf32>
    %101 = vector.broadcast %100 : vector<2x8x1xf32> to vector<2x8x8xf32>
    %102 = arith.mulf %97, %101 : vector<2x8x8xf32>
    "tpu.trace_start"() <{level = 10 : i32, message = "bqk,bkd->bqd"}> : () -> ()
    %cst_34 = arith.constant dense<0.000000e+00> : vector<2x8x16xf32>
    %103 = tpu.matmul %102, %89, %cst_34 {dimension_numbers = #tpu.dot_dimension_numbers<[2], [1], [1], [2], [0, 0, 0, 1, 1, 2], [0], [0]>} : vector<2x8x8xf32>, vector<2x8x16xf32>, vector<2x8x16xf32> -> vector<2x8x16xf32>
    "tpu.trace_stop"() : () -> ()
    %104 = vector.shape_cast %103 : vector<2x8x16xf32> to vector<16x16xf32>
    %105 = vector.extract_strided_slice %20 {offsets = [48, 0], sizes = [16, 32], strides = [1, 1]} : vector<64x32xf32> to vector<16x32xf32>
    %cst_35 = arith.constant dense<0.000000e+00> : vector<16x32xf32>
    %106 = tpu.matmul %104, %105, %cst_35 {dimension_numbers = #tpu.dot_dimension_numbers<[1], [0], [0], [1], [0, 0, 1, 1], [], []>} : vector<16x16xf32>, vector<16x32xf32>, vector<16x32xf32> -> vector<16x32xf32>
    %107 = arith.addf %86, %106 : vector<16x32xf32>
    %108 = arith.addf %107, %1 : vector<16x32xf32>
    %cst_36 = arith.constant dense<0.000000e+00> : vector<16xf32>
    %109 = vector.multi_reduction <add>, %108, %cst_36 [1] : vector<16x32xf32> to vector<16xf32>
    %110 = vector.shape_cast %109 : vector<16xf32> to vector<16x1xf32>
    %cst_37 = arith.constant 3.200000e+01 : f32
    %111 = vector.broadcast %cst_37 : f32 to vector<16x1xf32>
    %112 = arith.divf %110, %111 : vector<16x1xf32>
    %113 = vector.broadcast %112 : vector<16x1xf32> to vector<16x32xf32>
    %114 = arith.subf %108, %113 : vector<16x32xf32>
    %115 = arith.mulf %114, %114 : vector<16x32xf32>
    %cst_38 = arith.constant dense<0.000000e+00> : vector<16xf32>
    %116 = vector.multi_reduction <add>, %115, %cst_38 [1] : vector<16x32xf32> to vector<16xf32>
    %117 = vector.shape_cast %116 : vector<16xf32> to vector<16x1xf32>
    %cst_39 = arith.constant 3.200000e+01 : f32
    %118 = vector.broadcast %cst_39 : f32 to vector<16x1xf32>
    %119 = arith.divf %117, %118 : vector<16x1xf32>
    %120 = vector.broadcast %112 : vector<16x1xf32> to vector<16x32xf32>
    %121 = arith.subf %108, %120 : vector<16x32xf32>
    %cst_40 = arith.constant 9.99999974E-6 : f32
    %122 = vector.broadcast %cst_40 : f32 to vector<16x1xf32>
    %123 = arith.addf %119, %122 : vector<16x1xf32>
    %124 = math.rsqrt %123 : vector<16x1xf32>
    %125 = vector.broadcast %124 : vector<16x1xf32> to vector<16x32xf32>
    %126 = arith.mulf %121, %125 : vector<16x32xf32>
    %c0_41 = arith.constant 0 : index
    %c0_42 = arith.constant 0 : index
    %127 = vector.load %arg7[%c0_41, %c0_42] : memref<1x32xf32, #tpu.memory_space<vmem>>, vector<1x32xf32>
    %128 = vector.broadcast %127 : vector<1x32xf32> to vector<16x32xf32>
    %129 = arith.mulf %126, %128 : vector<16x32xf32>
    %c0_43 = arith.constant 0 : index
    %c0_44 = arith.constant 0 : index
    %130 = vector.load %arg8[%c0_43, %c0_44] : memref<1x32xf32, #tpu.memory_space<vmem>>, vector<1x32xf32>
    %131 = vector.broadcast %130 : vector<1x32xf32> to vector<16x32xf32>
    %132 = arith.addf %129, %131 : vector<16x32xf32>
    %c0_45 = arith.constant 0 : index
    %c0_46 = arith.constant 0 : index
    %133 = vector.load %arg9[%c0_45, %c0_46] : memref<32x64xf32, #tpu.memory_space<vmem>>, vector<32x64xf32>
    %cst_47 = arith.constant dense<0.000000e+00> : vector<16x64xf32>
    %134 = tpu.matmul %132, %133, %cst_47 {dimension_numbers = #tpu.dot_dimension_numbers<[1], [0], [0], [1], [0, 0, 1, 1], [], []>} : vector<16x32xf32>, vector<32x64xf32>, vector<16x64xf32> -> vector<16x64xf32>
    %c0_48 = arith.constant 0 : index
    %c0_49 = arith.constant 0 : index
    %135 = vector.load %arg10[%c0_48, %c0_49] : memref<1x64xf32, #tpu.memory_space<vmem>>, vector<1x64xf32>
    %136 = vector.broadcast %135 : vector<1x64xf32> to vector<16x64xf32>
    %137 = arith.addf %134, %136 : vector<16x64xf32>
    %cst_50 = arith.constant 0.000000e+00 : f32
    %138 = vector.broadcast %cst_50 : f32 to vector<16x64xf32>
    %139 = arith.maximumf %137, %138 : vector<16x64xf32>
    %c0_51 = arith.constant 0 : index
    %c0_52 = arith.constant 0 : index
    %140 = vector.load %arg11[%c0_51, %c0_52] : memref<64x32xf32, #tpu.memory_space<vmem>>, vector<64x32xf32>
    %cst_53 = arith.constant dense<0.000000e+00> : vector<16x32xf32>
    %141 = tpu.matmul %139, %140, %cst_53 {dimension_numbers = #tpu.dot_dimension_numbers<[1], [0], [0], [1], [0, 0, 1, 1], [], []>} : vector<16x64xf32>, vector<64x32xf32>, vector<16x32xf32> -> vector<16x32xf32>
    %c0_54 = arith.constant 0 : index
    %c0_55 = arith.constant 0 : index
    %142 = vector.load %arg12[%c0_54, %c0_55] : memref<1x32xf32, #tpu.memory_space<vmem>>, vector<1x32xf32>
    %143 = vector.broadcast %142 : vector<1x32xf32> to vector<16x32xf32>
    %144 = arith.addf %141, %143 : vector<16x32xf32>
    %145 = arith.addf %144, %132 : vector<16x32xf32>
    %cst_56 = arith.constant dense<0.000000e+00> : vector<16xf32>
    %146 = vector.multi_reduction <add>, %145, %cst_56 [1] : vector<16x32xf32> to vector<16xf32>
    %147 = vector.shape_cast %146 : vector<16xf32> to vector<16x1xf32>
    %cst_57 = arith.constant 3.200000e+01 : f32
    %148 = vector.broadcast %cst_57 : f32 to vector<16x1xf32>
    %149 = arith.divf %147, %148 : vector<16x1xf32>
    %150 = vector.broadcast %149 : vector<16x1xf32> to vector<16x32xf32>
    %151 = arith.subf %145, %150 : vector<16x32xf32>
    %152 = arith.mulf %151, %151 : vector<16x32xf32>
    %cst_58 = arith.constant dense<0.000000e+00> : vector<16xf32>
    %153 = vector.multi_reduction <add>, %152, %cst_58 [1] : vector<16x32xf32> to vector<16xf32>
    %154 = vector.shape_cast %153 : vector<16xf32> to vector<16x1xf32>
    %cst_59 = arith.constant 3.200000e+01 : f32
    %155 = vector.broadcast %cst_59 : f32 to vector<16x1xf32>
    %156 = arith.divf %154, %155 : vector<16x1xf32>
    %157 = vector.broadcast %149 : vector<16x1xf32> to vector<16x32xf32>
    %158 = arith.subf %145, %157 : vector<16x32xf32>
    %cst_60 = arith.constant 9.99999974E-6 : f32
    %159 = vector.broadcast %cst_60 : f32 to vector<16x1xf32>
    %160 = arith.addf %156, %159 : vector<16x1xf32>
    %161 = math.rsqrt %160 : vector<16x1xf32>
    %162 = vector.broadcast %161 : vector<16x1xf32> to vector<16x32xf32>
    %163 = arith.mulf %158, %162 : vector<16x32xf32>
    %c0_61 = arith.constant 0 : index
    %c0_62 = arith.constant 0 : index
    %164 = vector.load %arg13[%c0_61, %c0_62] : memref<1x32xf32, #tpu.memory_space<vmem>>, vector<1x32xf32>
    %165 = vector.broadcast %164 : vector<1x32xf32> to vector<16x32xf32>
    %166 = arith.mulf %163, %165 : vector<16x32xf32>
    %c0_63 = arith.constant 0 : index
    %c0_64 = arith.constant 0 : index
    %167 = vector.load %arg14[%c0_63, %c0_64] : memref<1x32xf32, #tpu.memory_space<vmem>>, vector<1x32xf32>
    %168 = vector.broadcast %167 : vector<1x32xf32> to vector<16x32xf32>
    %169 = arith.addf %166, %168 : vector<16x32xf32>
    %170 = vector.shape_cast %169 : vector<16x32xf32> to vector<2x8x32xf32>
    %c0_65 = arith.constant 0 : index
    %c0_66 = arith.constant 0 : index
    %c0_67 = arith.constant 0 : index
    %171 = vector.load %arg15[%c0_65, %c0_66, %c0_67] : memref<2x8x32xf32, #tpu.memory_space<vmem>>, vector<2x8x32xf32>
    tpu.vector_store %arg15[%c0_65, %c0_66, %c0_67], %170 {strides = array<i32>} : memref<2x8x32xf32, #tpu.memory_space<vmem>>, vector<2x8x32xf32>,
    return
  }
  func.func @transform_0(%arg0: i32) -> (i32, i32, i32) {
    %c0_i32 = arith.constant 0 : i32
    %c0_i32_0 = arith.constant 0 : i32
    %c0_i32_1 = arith.constant 0 : i32
    return %arg0, %c0_i32, %c0_i32_0 : i32, i32, i32
  }
  func.func @transform_1(%arg0: i32) -> (i32, i32, i32) {
    %c0_i32 = arith.constant 0 : i32
    %c0_i32_0 = arith.constant 0 : i32
    %c0_i32_1 = arith.constant 0 : i32
    return %arg0, %c0_i32, %c0_i32_0 : i32, i32, i32
  }
  func.func @transform_2(%arg0: i32) -> (i32, i32) {
    %c0_i32 = arith.constant 0 : i32
    %c0_i32_0 = arith.constant 0 : i32
    %c0_i32_1 = arith.constant 0 : i32
    return %c0_i32, %c0_i32_0 : i32, i32
  }
  func.func @transform_3(%arg0: i32) -> (i32, i32) {
    %c0_i32 = arith.constant 0 : i32
    %c0_i32_0 = arith.constant 0 : i32
    %c0_i32_1 = arith.constant 0 : i32
    return %c0_i32, %c0_i32_0 : i32, i32
  }
  func.func @transform_4(%arg0: i32) -> (i32, i32) {
    %c0_i32 = arith.constant 0 : i32
    %c0_i32_0 = arith.constant 0 : i32
    %c0_i32_1 = arith.constant 0 : i32
    return %c0_i32, %c0_i32_0 : i32, i32
  }
  func.func @transform_5(%arg0: i32) -> (i32, i32) {
    %c0_i32 = arith.constant 0 : i32
    %c0_i32_0 = arith.constant 0 : i32
    %c0_i32_1 = arith.constant 0 : i32
    return %c0_i32, %c0_i32_0 : i32, i32
  }
  func.func @transform_6(%arg0: i32) -> (i32, i32) {
    %c0_i32 = arith.constant 0 : i32
    %c0_i32_0 = arith.constant 0 : i32
    %c0_i32_1 = arith.constant 0 : i32
    return %c0_i32, %c0_i32_0 : i32, i32
  }
  func.func @transform_7(%arg0: i32) -> (i32, i32) {
    %c0_i32 = arith.constant 0 : i32
    %c0_i32_0 = arith.constant 0 : i32
    %c0_i32_1 = arith.constant 0 : i32
    return %c0_i32, %c0_i32_0 : i32, i32
  }
  func.func @transform_8(%arg0: i32) -> (i32, i32) {
    %c0_i32 = arith.constant 0 : i32
    %c0_i32_0 = arith.constant 0 : i32
    %c0_i32_1 = arith.constant 0 : i32
    return %c0_i32, %c0_i32_0 : i32, i32
  }
  func.func @transform_9(%arg0: i32) -> (i32, i32) {
    %c0_i32 = arith.constant 0 : i32
    %c0_i32_0 = arith.constant 0 : i32
    %c0_i32_1 = arith.constant 0 : i32
    return %c0_i32, %c0_i32_0 : i32, i32
  }
  func.func @transform_10(%arg0: i32) -> (i32, i32) {
    %c0_i32 = arith.constant 0 : i32
    %c0_i32_0 = arith.constant 0 : i32
    %c0_i32_1 = arith.constant 0 : i32
    return %c0_i32, %c0_i32_0 : i32, i32
  }
  func.func @transform_11(%arg0: i32) -> (i32, i32) {
    %c0_i32 = arith.constant 0 : i32
    %c0_i32_0 = arith.constant 0 : i32
    %c0_i32_1 = arith.constant 0 : i32
    return %c0_i32, %c0_i32_0 : i32, i32
  }
  func.func @transform_12(%arg0: i32) -> (i32, i32) {
    %c0_i32 = arith.constant 0 : i32
    %c0_i32_0 = arith.constant 0 : i32
    %c0_i32_1 = arith.constant 0 : i32
    return %c0_i32, %c0_i32_0 : i32, i32
  }
  func.func @transform_13(%arg0: i32) -> (i32, i32) {
    %c0_i32 = arith.constant 0 : i32
    %c0_i32_0 = arith.constant 0 : i32
    %c0_i32_1 = arith.constant 0 : i32
    return %c0_i32, %c0_i32_0 : i32, i32
  }
  func.func @transform_14(%arg0: i32) -> (i32, i32, i32) {
    %c0_i32 = arith.constant 0 : i32
    %c0_i32_0 = arith.constant 0 : i32
    %c0_i32_1 = arith.constant 0 : i32
    return %arg0, %c0_i32, %c0_i32_0 : i32, i32, i32
  }
}

</mosaic_0001>

<bundles_post_ra>
// kernel: tpu_custom_call.1
= control target key start
LH: loop header
LB: loop body
LE: loop exit
PB: predicated region body
PF: predicated region fallthrough
CT: control target
= control target key end

     0   :  { %v2522_v7 = vmov 0.0   ;;  %s2923_s0 = inlined_call_operand.vmem [shape: f32[2,8,32], index: 0, kind: input, shape index: {}]   ;;  %s2924_s1 = inlined_call_operand.vmem [shape: f32[2,1,8], index: 1, kind: input, shape index: {}]   ;;  %s2925_s2 = inlined_call_operand.vmem [shape: f32[32,192], index: 2, kind: input, shape index: {}]   ;;  %s2926_s3 = inlined_call_operand.vmem [shape: f32[1,192], index: 3, kind: input, shape index: {}]   ;;  %s2927_s4 = inlined_call_operand.vmem [shape: f32[64,32], index: 4, kind: input, shape index: {}]   ;;  %s2928_s5 = inlined_call_operand.vmem [shape: f32[1,32], index: 5, kind: input, shape index: {}]   ;;  %s2929_s6 = inlined_call_operand.vmem [shape: f32[1,32], index: 6, kind: input, shape index: {}]   ;;  %s2930_s7 = inlined_call_operand.vmem [shape: f32[1,32], index: 7, kind: input, shape index: {}]   ;;  %s2931_s8 = inlined_call_operand.vmem [shape: f32[32,64], index: 8, kind: input, shape index: {}]   ;;  %s2932_s9 = inlined_call_operand.vmem [shape: f32[1,64], index: 9, kind: input, shape index: {}]   ;;  %s2933_s10 = inlined_call_operand.vmem [shape: f32[64,32], index: 10, kind: input, shape index: {}]   ;;  %s2934_s11 = inlined_call_operand.vmem [shape: f32[1,32], index: 11, kind: input, shape index: {}]   ;;  %s2935_s12 = inlined_call_operand.vmem [shape: f32[1,32], index: 12, kind: input, shape index: {}]   ;;  %s2936_s13 = inlined_call_operand.vmem [shape: f32[1,32], index: 13, kind: input, shape index: {}]   ;;  %s2937_s14 = inlined_call_operand.hbm [shape: f32[2,8,32], index: 14, kind: output, shape index: {}]  }
   0x1   :  { %v57_v0 = vld [vmem:[%s2925_s2 + $0x8] sm:$0xff]  ;;  %v59_v1 = vld [vmem:[%s2925_s2 + $0x18] sm:$0xff]  ;;  %v56_v2 = vld [vmem:[%s2925_s2] sm:$0xff]  ;;  %147 = vmatprep.mubr.f32.mxu0 %v2522_v7  ;;  %2257 = vmatprep.subr.mxu1 %v2522_v7 }
   0x2   :  { %v2390_v3 = vpack.c.bf16 %v59_v1, %v57_v0  ;;  %v58_v4 = vld [vmem:[%s2925_s2 + $0x10] sm:$0xff]  ;;  %v61_v5 = vld [vmem:[%s2925_s2 + $0x28] sm:$0xff]  ;;  %v63_v6 = vld [vmem:[%s2925_s2 + $0x38] sm:$0xff] }
   0x3   :  { %v2392_v8 = vpack.c.bf16 %v58_v4, %v56_v2  ;;  %v2394_v9 = vpack.c.bf16 %v63_v6, %v61_v5  ;;  %v60_v10 = vld [vmem:[%s2925_s2 + $0x20] sm:$0xff]  ;;  %v62_v11 = vld [vmem:[%s2925_s2 + $0x30] sm:$0xff] }
   0x4   :  { %2391 = vmatprep.subr.bf16.mxu0 %v2390_v3 }
   0x5   :  { %19 = vsyncpa [#allocation3], 0  ;;  %2393 = vmatpush1.bf16.msra.mxu0 %v2392_v8  ;;  %v2396_v12 = vpack.c.bf16 %v62_v11, %v60_v10  ;;  %v2638_v13 = vld [vmem:[%s2923_s0] sm:$0xff]  ;;  %vm76_vm0 = vcmask 261120   ;;  %v2647_v14 = vld [vmem:[%s2923_s0 + $0x8] sm:$0xff]  ;;  %v66_v15 = vlaneseq  ;;  %vm2523_vm1 = vmmov 0  }
   0x6   :  { %2395 = vmatprep.subr.bf16.mxu0 %v2394_v9  ;;  %2259 = vmatprep.mubr.msk.f32.mxu1 %vm2523_vm1, %v2522_v7  ;;  %v64_v18 = vld [vmem:[%s2926_s3] sm:$0x3]  ;;  %s2524_s0 = smov 64   ;;  %vm192_vm2 = vcmask 130048   ;;  %vm346_vm3 = vcmask 64512   ;;  %s2526_s21 = smov 112  }
   0x7   :  { %v67_v16 = vshrl.u32 %v66_v15, 7  ;;  %v50_v34 = vld [vmem:[%s2924_s1] sm:$0x1]  ;;  %v51_v36 = vld [vmem:[%s2924_s1 + $0x1] sm:$0x1]  ;;  %s2525_s1 = smov 48  }
   0x8   :  { %v2141_v35 = vadd.f32 -1.0, %v50_v34  ;;  %v2142_v38 = vadd.f32 -1.0, %v51_v36  ;;  %v162_v60 = vld [vmem:[%s2927_s4] sm:$0xff]  ;;  %v163_v61 = vld [vmem:[%s2927_s4 + $0x8] sm:$0xff]  ;;  %s2527_s26 = smov 32   ;;  %s2528_s27 = smov 96  }
   0x9   :  { %2397 = vmatpush1.bf16.msra.mxu0 %v2396_v12  ;;  %v68_v17 = vsub.s32 0, %v67_v16  ;;  %v72_v26 = vsub.s32 1, %v67_v16  ;;  %v2398_v62 = vpack.c.bf16 %v163_v61, %v162_v60  ;;  %s2529_s28 = smov 80   ;;  %s2530_s16 = smov 16   ;;  %vm1995_vm4 = vcmask 523264  }
   0xa   :  { %2252 = vmatprep.subr.mxu0 %v2522_v7  ;;  %v54_v37 = vmul.f32 1e+09, %v2141_v35  ;;  %v55_v40 = vmul.f32 1e+09, %v2142_v38  ;;  %s2531_s30 = smov [#allocation2]  }
   0xb   :  { %v69_v19 = vrot.slane %v64_v18, %v68_v17  ;;  %v73_v28 = vrot.slane %v64_v18, %v72_v26  ;;  %s2130_s2 = sshll.u32 %s2531_s30, 4  ;;  %s2131_s2 = int_to_ptr.vmem [resolvable:$true] %s2130_s2 }
   0xc   :  { %2143 = vmatmul.mubr.msk.f32.vlgmr.msra.gmra.mrb[0].mxu0 %vm76_vm0, %v2638_v13  ;;  %v2695_v39 = vrot.slane %v54_v37, %v68_v17  ;;  %v2698_v44 = vrot.slane %v55_v40, %v68_v17  ;;  %s2498_s15 = scalar_lea.vmem %s2131_s2, 256  ;;  %p2503_p1 = scmp.lt.s32.totalorder %s2131_s2, %s2131_s2 }
   0xd   :  { %153 = vmatprep.mubr.f32.mxu0 %v2522_v7  ;;  %p2499_p0 = scmp.ne.s32.totalorder %s2131_s2, %s2498_s15  ;;  %p2504_p2 = scmp.lt.s32.totalorder %s2498_s15, %s2498_s15 }
   0xf   :  { %p2505_p3 = por %p2504_p2, %p2503_p1 }
  0x10   :  { %2144 = vmatmul.mubr.msk.f32.gmra.mrb[2].mxu0 %vm76_vm0, %v2647_v14 }
  0x11   :  { %2254 = vmatprep.mubr.msk.f32.mxu0 %vm2523_vm1, %v2522_v7  ;;  %p2506_p4 = pnand %p2505_p3, %p2499_p0 }
  0xdf   :  { %v149_v20 = vpop.f32.mrb[0].mxu0 }
  0xe0   :  { %v2658_v21 = vadd.f32 %v149_v20, %v69_v19  ;;  %v151_v22 = vpop.f32.mrb[1].mxu0 }
  0xe1   :  { %v2681_v33 = vadd.f32 %v151_v22, %v73_v28 }
  0xe2   :  { %190 = vrot.lane.b32.xlu0 %v2658_v21, %s2524_s0  ;;  %v2666_v29 = vmul.f32 0.25, %v2658_v21 }
  0xe3   :  { %v155_v23 = vpop.f32.mrb[2].mxu0 }
  0xe4   :  { %v2661_v24 = vadd.f32 %v155_v23, %v69_v19  ;;  %v157_v25 = vpop.f32.mrb[3].mxu0 }
  0xe5   :  { %v2669_v30 = vadd.f32 %v157_v25, %v73_v28 }
  0xe6   :  { %269 = vrot.lane.b32.xlu0 %v2661_v24, %s2524_s0  ;;  %v2676_v32 = vmul.f32 0.25, %v2661_v24 }
 0x154   :  { %v191_v27 = vpop.permute.xlu0 %190 }
 0x155   :  { %2253 = vmatpush3.xpose.msk.msra.mxu0 %vm192_vm2, %v191_v27 }
 0x156   :  { %2267 = vmatprep.subr.mxu0 %v2522_v7 }
 0x158   :  { %v270_v31 = vpop.permute.xlu0 %269  ;;  %2255 = vmatmul.mubr.msk.f32.vlgmr.msra.gmra.mrb[4].mxu0 %vm192_vm2, %v2666_v29 }
 0x159   :  { %2258 = vmatpush3.xpose.msk.msra.mxu1 %vm192_vm2, %v270_v31  ;;  %2268 = vmatpush3.msra.mxu0 %v2669_v30 }
 0x15a   :  { %2262 = vmatprep.subr.mxu1 %v2522_v7  ;;  %2269 = vmatprep.mubr.msk.f32.mxu0 %vm2523_vm1, %v2522_v7 }
 0x15b   :  { %2279 = vmatprep.subr.mxu0 %v2522_v7 }
 0x15c   :  { %2260 = vmatmul.mubr.msk.f32.vlgmr.msra.gmra.mrb[0].mxu1 %vm192_vm2, %v2676_v32 }
 0x15d   :  { %2263 = vmatpush3.msra.mxu1 %v2681_v33  ;;  %2264 = vmatprep.mubr.msk.f32.mxu1 %vm2523_vm1, %v2522_v7 }
 0x15e   :  { %2399 = vmatprep.subr.bf16.mxu1 %v2398_v62 }
 0x22b   :  { %v264_v41 = vpop.f32.mrb[4].mxu0 }
 0x22c   :  { %v265_v42 = vadd.f32 %v264_v41, %v2695_v39  ;;  %v2256_v43 = vpop.f32.mrb[5].mxu0 }
 0x22e   :  { %v347_v45 = vsel %vm346_vm3, %v265_v42, -inf }
 0x22f   :  { %v342_v46 = vpop.f32.mrb[0].mxu1  ;;  %348 = vmax.xlane.f32.xlu1 %v347_v45 }
 0x230   :  { %v343_v47 = vadd.f32 %v342_v46, %v2698_v44  ;;  %v2261_v48 = vpop.f32.mrb[1].mxu1 }
 0x232   :  { %v350_v49 = vsel %vm346_vm3, %v343_v47, -inf }
 0x233   :  { %351 = vmax.xlane.f32.xlu1 %v350_v49 }
 0x2bc   :  { %v349_v50 = vpop.xlane.xlu1 %348 }
 0x2bd   :  { %v353_v51 = vsub.f32 %v265_v42, %v349_v50 }
 0x2bf   :  { %v355_v52 = vmul.f32 1.442695, %v353_v51 }
 0x2c0   :  { %v352_v53 = vpop.xlane.xlu1 %351 }
 0x2c1   :  { %2458 = vpow2.f32 %v355_v52  ;;  %v354_v54 = vsub.f32 %v343_v47, %v352_v53 }
 0x2c3   :  { %v357_v55 = vmul.f32 1.442695, %v354_v54 }
 0x2c5   :  { %2460 = vpow2.f32 %v357_v55 }
 0x2cb   :  { %v2459_v56 = vpop.eup %2458 }
 0x2cc   :  { %v359_v57 = vsel %vm346_vm3, %v2459_v56, 0.0 }
 0x2cd   :  { %360 = vadd.xlane.f32.xlu0 %v359_v57 }
 0x2cf   :  { %v2461_v58 = vpop.eup %2460 }
 0x2d0   :  { %v362_v59 = vsel %vm346_vm3, %v2461_v58, 0.0 }
 0x2d1   :  { %363 = vadd.xlane.f32.xlu1 %v362_v59 }
 0x2e2   :  { %600 = vrot.lane.b32.xlu1 %v2658_v21, %s2525_s1 }
 0x2e6   :  { %598 = vrot.lane.b32.xlu1 %v2666_v29, %s2526_s21 }
 0x2ea   :  { %678 = vrot.lane.b32.xlu1 %v2661_v24, %s2525_s1 }
 0x2ee   :  { %676 = vrot.lane.b32.xlu1 %v2676_v32, %s2526_s21 }
 0x35a   :  { %v361_v63 = vpop.xlane.xlu0 %360 }
 0x35b   :  { %2462 = vrcp.f32 %v361_v63 }
 0x35e   :  { %v364_v0 = vpop.xlane.xlu1 %363 }
 0x35f   :  { %2464 = vrcp.f32 %v364_v0  ;;  %v164_v0 = vld [vmem:[%s2927_s4 + $0x10] sm:$0xff] }
 0x362   :  { %v601_v4 = vpop.permute.xlu1 %600 }
 0x365   :  { %v2463_v1 = vpop.eup %2462 }
 0x366   :  { %v367_v2 = vmul.f32 %v2463_v1, %v2459_v56  ;;  %v599_v6 = vpop.permute.xlu1 %598  ;;  %v165_v1 = vld [vmem:[%s2927_s4 + $0x18] sm:$0xff] }
 0x368   :  { %2265 = vmatmul.mubr.msk.f32.vlgmr.msra.gmra.mrb[2].mxu1 %vm346_vm3, %v367_v2  ;;  %v2402_v2 = vpack.c.bf16 %v165_v1, %v164_v0 }
 0x369   :  { %v2465_v3 = vpop.eup %2464  ;;  %2401 = vmatpush3.bf16.msra.mxu1 %v2398_v62 }
 0x36a   :  { %v368_v5 = vmul.f32 %v2465_v3, %v2461_v58  ;;  %2284 = vmatprep.subr.mxu1 %v2522_v7  ;;  %v679_v10 = vpop.permute.xlu1 %678 }
 0x36c   :  { %2270 = vmatmul.mubr.msk.f32.vlgmr.msra.gmra.mrb[6].mxu0 %vm346_vm3, %v368_v5 }
 0x36d   :  { %2280 = vmatpush3.xpose.msk.msra.mxu0 %vm192_vm2, %v601_v4  ;;  %2281 = vmatprep.mubr.msk.f32.mxu0 %vm2523_vm1, %v2522_v7 }
 0x36e   :  { %2289 = vmatprep.subr.mxu0 %v2522_v7  ;;  %v677_v15 = vpop.permute.xlu1 %676 }
 0x370   :  { %2282 = vmatmul.mubr.msk.f32.vlgmr.msra.gmra.mrb[8].mxu0 %vm192_vm2, %v599_v6 }
 0x371   :  { %2291 = vmatprep.mubr.msk.f32.mxu0 %vm2523_vm1, %v2522_v7 }
 0x43b   :  { %v438_v8 = vpop.f32.mrb[2].mxu1 }
 0x43c   :  { %v2266_v9 = vpop.f32.mrb[3].mxu1  ;;  %2276 = vmatprep.mubr.msk.f32.mxu1 %vm192_vm2, %v438_v8 }
 0x43f   :  { %v511_v11 = vpop.f32.mrb[6].mxu0 }
 0x440   :  { %v2271_v12 = vpop.f32.mrb[7].mxu0  ;;  %2277 = vmatmul.mubr.msk.f32.vlgmr.msra.gmra.mrb[4].mxu1 %vm192_vm2, %v511_v11 }
 0x441   :  { %2285 = vmatpush3.xpose.msk.msra.mxu1 %vm192_vm2, %v679_v10  ;;  %2286 = vmatprep.mubr.msk.f32.mxu1 %vm2523_vm1, %v2522_v7 }
 0x442   :  { %2294 = vmatprep.subr.mxu1 %v2522_v7 }
 0x443   :  { %v672_v16 = vpop.f32.mrb[8].mxu0 }
 0x444   :  { %v673_v17 = vadd.f32 %v672_v16, %v2695_v39  ;;  %v2283_v18 = vpop.f32.mrb[9].mxu0  ;;  %2287 = vmatmul.mubr.msk.f32.vlgmr.msra.gmra.mrb[6].mxu1 %vm192_vm2, %v677_v15 }
 0x445   :  { %2296 = vmatprep.mubr.msk.f32.mxu1 %vm2523_vm1, %v2522_v7 }
 0x446   :  { %v754_v19 = vsel %vm346_vm3, %v673_v17, -inf }
 0x447   :  { %755 = vmax.xlane.f32.xlu0 %v754_v19  ;;  %v166_v19 = vld [vmem:[%s2927_s4 + $0x20] sm:$0xff] }
 0x45d   :  { %777 = vrot.lane.b32.xlu0 %v2681_v33, %s2526_s21 }
 0x461   :  { %1015 = vrot.lane.b32.xlu0 %v2658_v21, %s2527_s26 }
 0x465   :  { %1013 = vrot.lane.b32.xlu0 %v2666_v29, %s2528_s27 }
 0x469   :  { %1093 = vrot.lane.b32.xlu0 %v2661_v24, %s2527_s26 }
 0x46d   :  { %1091 = vrot.lane.b32.xlu0 %v2676_v32, %s2528_s27 }
 0x4d4   :  { %v756_v20 = vpop.xlane.xlu0 %755 }
 0x4d5   :  { %v760_v22 = vsub.f32 %v673_v17, %v756_v20 }
 0x4d7   :  { %v762_v23 = vmul.f32 1.442695, %v760_v22 }
 0x4d8   :  { %v778_v25 = vpop.permute.xlu0 %777 }
 0x4d9   :  { %2466 = vpow2.f32 %v762_v23  ;;  %2290 = vmatpush3.msra.mxu0 %v778_v25 }
 0x4da   :  { %2306 = vmatprep.subr.mxu0 %v2522_v7 }
 0x4dc   :  { %v1016_v37 = vpop.permute.xlu0 %1015 }
 0x4e0   :  { %v1014_v38 = vpop.permute.xlu0 %1013 }
 0x4e3   :  { %v2467_v26 = vpop.eup %2466 }
 0x4e4   :  { %v766_v27 = vsel %vm346_vm3, %v2467_v26, 0.0  ;;  %v1094_v42 = vpop.permute.xlu0 %1093 }
 0x4e5   :  { %767 = vadd.xlane.f32.xlu1 %v766_v27 }
 0x4e8   :  { %v1092_v43 = vpop.permute.xlu0 %1091 }
 0x517   :  { %v750_v28 = vpop.f32.mrb[6].mxu1 }
 0x518   :  { %v751_v31 = vadd.f32 %v750_v28, %v2698_v44  ;;  %v2288_v34 = vpop.f32.mrb[7].mxu1 }
 0x51a   :  { %v757_v35 = vsel %vm346_vm3, %v751_v31, -inf }
 0x51b   :  { %758 = vmax.xlane.f32.xlu1 %v757_v35 }
 0x52c   :  { %854 = vrot.lane.b32.xlu1 %v2669_v30, %s2526_s21 }
 0x572   :  { %v768_v36 = vpop.xlane.xlu1 %767 }
 0x573   :  { %2468 = vrcp.f32 %v768_v36 }
 0x57d   :  { %v2469_v40 = vpop.eup %2468 }
 0x57e   :  { %v774_v41 = vmul.f32 %v2469_v40, %v2467_v26 }
 0x580   :  { %2292 = vmatmul.mubr.msk.f32.vlgmr.msra.gmra.mrb[10].mxu0 %vm346_vm3, %v774_v41 }
 0x581   :  { %2307 = vmatpush3.xpose.msk.msra.mxu0 %vm192_vm2, %v1016_v37  ;;  %2308 = vmatprep.mubr.msk.f32.mxu0 %vm2523_vm1, %v2522_v7 }
 0x582   :  { %2311 = vmatprep.subr.mxu0 %v2522_v7 }
 0x584   :  { %2309 = vmatmul.mubr.msk.f32.vlgmr.msra.gmra.mrb[12].mxu0 %vm192_vm2, %v1014_v38 }
 0x585   :  { %2312 = vmatpush3.xpose.msk.msra.mxu0 %vm192_vm2, %v1094_v42  ;;  %2313 = vmatprep.mubr.msk.f32.mxu0 %vm2523_vm1, %v2522_v7 }
 0x586   :  { %2321 = vmatprep.subr.mxu0 %v2522_v7 }
 0x588   :  { %2314 = vmatmul.mubr.msk.f32.vlgmr.msra.gmra.mrb[14].mxu0 %vm192_vm2, %v1092_v43 }
 0x589   :  { %2323 = vmatprep.mubr.msk.f32.mxu0 %vm2523_vm1, %v2522_v7 }
 0x5a8   :  { %v759_v45 = vpop.xlane.xlu1 %758 }
 0x5a9   :  { %v761_v46 = vsub.f32 %v751_v31, %v759_v45 }
 0x5ab   :  { %v764_v47 = vmul.f32 1.442695, %v761_v46 }
 0x5ac   :  { %v855_v48 = vpop.permute.xlu1 %854 }
 0x5ad   :  { %2470 = vpow2.f32 %v764_v47  ;;  %2295 = vmatpush3.msra.mxu1 %v855_v48 }
 0x5ae   :  { %2403 = vmatprep.subr.bf16.mxu1 %v2402_v2 }
 0x5b7   :  { %v2471_v49 = vpop.eup %2470 }
 0x5b8   :  { %v769_v50 = vsel %vm346_vm3, %v2471_v49, 0.0 }
 0x5b9   :  { %770 = vadd.xlane.f32.xlu0 %v769_v50 }
 0x646   :  { %v771_v51 = vpop.xlane.xlu0 %770 }
 0x647   :  { %2472 = vrcp.f32 %v771_v51 }
 0x651   :  { %v2473_v52 = vpop.eup %2472 }
 0x652   :  { %v775_v53 = vmul.f32 %v2473_v52, %v2471_v49 }
 0x653   :  { %v849_v54 = vpop.f32.mrb[10].mxu0 }
 0x654   :  { %v2293_v55 = vpop.f32.mrb[11].mxu0  ;;  %2297 = vmatmul.mubr.msk.f32.vlgmr.msra.gmra.mrb[8].mxu1 %vm346_vm3, %v775_v53 }
 0x655   :  { %2303 = vmatprep.mubr.msk.f32.mxu1 %vm192_vm2, %v849_v54  ;;  %2405 = vmatpush3.bf16.msra.mxu1 %v2402_v2 }
 0x656   :  { %2316 = vmatprep.subr.mxu1 %v2522_v7 }
 0x657   :  { %v1087_v56 = vpop.f32.mrb[12].mxu0 }
 0x658   :  { %v1088_v57 = vadd.f32 %v1087_v56, %v2695_v39  ;;  %v2310_v58 = vpop.f32.mrb[13].mxu0 }
 0x65a   :  { %v1169_v59 = vsel %vm346_vm3, %v1088_v57, -inf }
 0x65b   :  { %1170 = vmax.xlane.f32.xlu1 %v1169_v59  ;;  %v1165_v60 = vpop.f32.mrb[14].mxu0 }
 0x65c   :  { %v1166_v61 = vadd.f32 %v1165_v60, %v2698_v44  ;;  %v2315_v62 = vpop.f32.mrb[15].mxu0  ;;  %v169_v60 = vld [vmem:[%s2927_s4 + $0x38] sm:$0xff] }
 0x65e   :  { %v1172_v63 = vsel %vm346_vm3, %v1166_v61, -inf }
 0x65f   :  { %1173 = vmax.xlane.f32.xlu0 %v1172_v63 }
 0x66c   :  { %1267 = vrot.lane.b32.xlu1 %v2669_v30, %s2528_s27 }
 0x670   :  { %1426 = vrot.lane.b32.xlu1 %v2666_v29, %s2529_s28 }
 0x6e8   :  { %v1171_v3 = vpop.xlane.xlu1 %1170 }
 0x6e9   :  { %v1175_v4 = vsub.f32 %v1088_v57, %v1171_v3 }
 0x6eb   :  { %v1177_v5 = vmul.f32 1.442695, %v1175_v4 }
 0x6ec   :  { %v1268_v6 = vpop.permute.xlu1 %1267  ;;  %v1174_v8 = vpop.xlane.xlu0 %1173 }
 0x6ed   :  { %2474 = vpow2.f32 %v1177_v5  ;;  %v1176_v29 = vsub.f32 %v1166_v61, %v1174_v8  ;;  %2322 = vmatpush3.msra.mxu0 %v1268_v6  ;;  %v2145_v5 = vld [vmem:[%s2928_s5] ss:$0 sm:$0xff] }
 0x6ee   :  { %2333 = vmatprep.subr.mxu0 %v2522_v7 }
 0x6ef   :  { %v1179_v9 = vmul.f32 1.442695, %v1176_v29 }
 0x6f0   :  { %v1427_v28 = vpop.permute.xlu1 %1426 }
 0x6f1   :  { %2476 = vpow2.f32 %v1179_v9 }
 0x6f7   :  { %v2475_v10 = vpop.eup %2474 }
 0x6f8   :  { %v1181_v11 = vsel %vm346_vm3, %v2475_v10, 0.0 }
 0x6f9   :  { %1182 = vadd.xlane.f32.xlu0 %v1181_v11 }
 0x6fb   :  { %v2477_v12 = vpop.eup %2476 }
 0x6fc   :  { %v1184_v15 = vsel %vm346_vm3, %v2477_v12, 0.0 }
 0x6fd   :  { %1185 = vadd.xlane.f32.xlu0 %v1184_v15 }
 0x713   :  { %1191 = vrot.lane.b32.xlu0 %v2681_v33, %s2528_s27 }
 0x717   :  { %1428 = vrot.lane.b32.xlu0 %v2658_v21, %s2530_s16  ;;  %v167_v21 = vld [vmem:[%s2927_s4 + $0x28] sm:$0xff] }
 0x71b   :  { %1506 = vrot.lane.b32.xlu0 %v2661_v24, %s2530_s16 }
 0x71f   :  { %1504 = vrot.lane.b32.xlu0 %v2676_v32, %s2529_s28  ;;  %v2406_v32 = vpack.c.bf16 %v167_v21, %v166_v19 }
 0x727   :  { %v926_v16 = vpop.f32.mrb[8].mxu1 }
 0x728   :  { %v2298_v17 = vpop.f32.mrb[9].mxu1  ;;  %2304 = vmatmul.mubr.msk.f32.vlgmr.msra.gmra.mrb[4].mxu1 %vm192_vm2, %v926_v16 }
 0x729   :  { %2318 = vmatprep.mubr.msk.f32.mxu1 %vm2523_vm1, %v2522_v7 }
 0x786   :  { %v1183_v18 = vpop.xlane.xlu0 %1182 }
 0x787   :  { %2478 = vrcp.f32 %v1183_v18 }
 0x78a   :  { %v1186_v24 = vpop.xlane.xlu0 %1185 }
 0x78b   :  { %2480 = vrcp.f32 %v1186_v24 }
 0x78e   :  { %v1192_v20 = vpop.permute.xlu0 %1191 }
 0x78f   :  { %2317 = vmatpush3.msra.mxu1 %v1192_v20 }
 0x790   :  { %2407 = vmatprep.subr.bf16.mxu1 %v2406_v32 }
 0x791   :  { %v2479_v22 = vpop.eup %2478 }
 0x792   :  { %v1189_v23 = vmul.f32 %v2479_v22, %v2475_v10  ;;  %v1429_v27 = vpop.permute.xlu0 %1428 }
 0x794   :  { %2319 = vmatmul.mubr.msk.f32.vlgmr.msra.gmra.mrb[10].mxu1 %vm346_vm3, %v1189_v23  ;;  %v1887_v23 = vld [vmem:[%s2931_s8 + $0x8] sm:$0xff] }
 0x795   :  { %v2481_v25 = vpop.eup %2480  ;;  %2409 = vmatpush3.bf16.msra.mxu1 %v2406_v32 }
 0x796   :  { %v1190_v26 = vmul.f32 %v2481_v25, %v2477_v12  ;;  %2338 = vmatprep.subr.mxu1 %v2522_v7  ;;  %v1507_v35 = vpop.permute.xlu0 %1506 }
 0x798   :  { %2324 = vmatmul.mubr.msk.f32.vlgmr.msra.gmra.mrb[16].mxu0 %vm346_vm3, %v1190_v26  ;;  %v1888_v26 = vld [vmem:[%s2931_s8 + $0x10] sm:$0xff] }
 0x799   :  { %2334 = vmatpush3.xpose.msk.msra.mxu0 %vm192_vm2, %v1429_v27  ;;  %2335 = vmatprep.mubr.msk.f32.mxu0 %vm2523_vm1, %v2522_v7  ;;  %v1889_v27 = vld [vmem:[%s2931_s8 + $0x18] sm:$0xff] }
 0x79a   :  { %2343 = vmatprep.subr.mxu0 %v2522_v7  ;;  %v1505_v38 = vpop.permute.xlu0 %1504 }
 0x79c   :  { %2336 = vmatmul.mubr.msk.f32.vlgmr.msra.gmra.mrb[18].mxu0 %vm192_vm2, %v1427_v28  ;;  %v2418_v28 = vpack.c.bf16 %v1889_v27, %v1888_v26  ;;  %v2186_v26 = vld [vmem:[%s2935_s12] ss:$0 sm:$0xff] }
 0x79d   :  { %2345 = vmatprep.mubr.msk.f32.mxu0 %vm2523_vm1, %v2522_v7 }
 0x867   :  { %v1263_v31 = vpop.f32.mrb[10].mxu1 }
 0x868   :  { %v2320_v34 = vpop.f32.mrb[11].mxu1  ;;  %2330 = vmatprep.mubr.msk.f32.mxu1 %vm192_vm2, %v1263_v31  ;;  %v1980_v31 = vld [vmem:[%s2933_s10] sm:$0xff] }
 0x869   :  { %v1981_v34 = vld [vmem:[%s2933_s10 + $0x8] sm:$0xff] }
 0x86b   :  { %v1339_v36 = vpop.f32.mrb[16].mxu0 }
 0x86c   :  { %v2325_v37 = vpop.f32.mrb[17].mxu0  ;;  %2331 = vmatmul.mubr.msk.f32.vlgmr.msra.gmra.mrb[4].mxu1 %vm192_vm2, %v1339_v36  ;;  %v2422_v36 = vpack.c.bf16 %v1981_v34, %v1980_v31  ;;  %v2187_v34 = vld [vmem:[%s2936_s13] ss:$0 sm:$0xff] }
 0x86d   :  { %2339 = vmatpush3.xpose.msk.msra.mxu1 %vm192_vm2, %v1507_v35  ;;  %2340 = vmatprep.mubr.msk.f32.mxu1 %vm2523_vm1, %v2522_v7  ;;  %v1982_v35 = vld [vmem:[%s2933_s10 + $0x10] sm:$0xff]  ;;  %v1983_v37 = vld [vmem:[%s2933_s10 + $0x18] sm:$0xff] }
 0x86e   :  { %2348 = vmatprep.subr.mxu1 %v2522_v7 }
 0x86f   :  { %v1500_v40 = vpop.f32.mrb[18].mxu0 }
 0x870   :  { %v1501_v41 = vadd.f32 %v1500_v40, %v2695_v39  ;;  %v2337_v42 = vpop.f32.mrb[19].mxu0  ;;  %2341 = vmatmul.mubr.msk.f32.vlgmr.msra.gmra.mrb[12].mxu1 %vm192_vm2, %v1505_v38  ;;  %v2426_v38 = vpack.c.bf16 %v1983_v37, %v1982_v35  ;;  %v1984_v40 = vld [vmem:[%s2933_s10 + $0x20] sm:$0xff] }
 0x871   :  { %2350 = vmatprep.mubr.msk.f32.mxu1 %vm2523_vm1, %v2522_v7 }
 0x872   :  { %v1582_v43 = vsel %vm346_vm3, %v1501_v41, -inf }
 0x873   :  { %1583 = vmax.xlane.f32.xlu1 %v1582_v43 }
 0x900   :  { %v1584_v45 = vpop.xlane.xlu1 %1583 }
 0x901   :  { %v1588_v46 = vsub.f32 %v1501_v41, %v1584_v45  ;;  %v1985_v41 = vld [vmem:[%s2933_s10 + $0x28] sm:$0xff] }
 0x902   :  { %v2430_v42 = vpack.c.bf16 %v1985_v41, %v1984_v40 }
 0x903   :  { %v1590_v47 = vmul.f32 1.442695, %v1588_v46 }
 0x905   :  { %2482 = vpow2.f32 %v1590_v47 }
 0x90f   :  { %v2483_v39 = vpop.eup %2482 }
 0x910   :  { %v1594_v52 = vsel %vm346_vm3, %v2483_v39, 0.0 }
 0x943   :  { %v1578_v48 = vpop.f32.mrb[12].mxu1 }
 0x944   :  { %v1579_v49 = vadd.f32 %v1578_v48, %v2698_v44  ;;  %v2342_v50 = vpop.f32.mrb[13].mxu1 }
 0x946   :  { %v1585_v51 = vsel %vm346_vm3, %v1579_v49, -inf }
 0x947   :  { %1586 = vmax.xlane.f32.xlu0 %v1585_v51  ;;  %v2178_v51 = vld [vmem:[%s2929_s6] ss:$0 sm:$0xff] }
 0x94b   :  { %1595 = vadd.xlane.f32.xlu0 %v1594_v52 }
 0x961   :  { %1604 = vrot.lane.b32.xlu0 %v2681_v33, %s2529_s28  ;;  %v168_v33 = vld [vmem:[%s2927_s4 + $0x30] sm:$0xff] }
 0x962   :  { %v2410_v62 = vpack.c.bf16 %v169_v60, %v168_v33  ;;  %v2180_v33 = vld [vmem:[%s2932_s9] ss:$0 sm:$0xff] }
 0x9d4   :  { %v1587_v7 = vpop.xlane.xlu0 %1586 }
 0x9d5   :  { %v1589_v53 = vsub.f32 %v1579_v49, %v1587_v7 }
 0x9d7   :  { %v1592_v54 = vmul.f32 1.442695, %v1589_v53 }
 0x9d8   :  { %v1596_v55 = vpop.xlane.xlu0 %1595 }
 0x9d9   :  { %2484 = vpow2.f32 %v1592_v54  ;;  %v2179_v54 = vld [vmem:[%s2930_s7] ss:$0 sm:$0xff] }
 0x9da   :  { %2486 = vrcp.f32 %v1596_v55 }
 0x9dc   :  { %v1605_v56 = vpop.permute.xlu0 %1604 }
 0x9dd   :  { %2344 = vmatpush3.msra.mxu0 %v1605_v56 }
 0x9e3   :  { %v2485_v44 = vpop.eup %2484 }
 0x9e4   :  { %v2487_v57 = vpop.eup %2486  ;;  %v1597_v58 = vsel %vm346_vm3, %v2485_v44, 0.0 }
 0x9e5   :  { %v1602_v59 = vmul.f32 %v2487_v57, %v2483_v39  ;;  %1598 = vadd.xlane.f32.xlu1 %v1597_v58  ;;  %v1986_v57 = vld [vmem:[%s2933_s10 + $0x30] sm:$0xff]  ;;  %v1987_v58 = vld [vmem:[%s2933_s10 + $0x38] sm:$0xff] }
 0x9e7   :  { %2346 = vmatmul.mubr.msk.f32.vlgmr.msra.gmra.mrb[20].mxu0 %vm346_vm3, %v1602_v59  ;;  %v2434_v59 = vpack.c.bf16 %v1987_v58, %v1986_v57 }
 0x9f6   :  { %1680 = vrot.lane.b32.xlu1 %v2669_v30, %s2529_s28 }
 0xa72   :  { %v1599_v61 = vpop.xlane.xlu1 %1598 }
 0xa73   :  { %2488 = vrcp.f32 %v1599_v61 }
 0xa76   :  { %v1681_v63 = vpop.permute.xlu1 %1680 }
 0xa77   :  { %2349 = vmatpush3.msra.mxu1 %v1681_v63 }
 0xa78   :  { %2411 = vmatprep.subr.bf16.mxu1 %v2410_v62 }
 0xa7d   :  { %v2489_v0 = vpop.eup %2488 }
 0xa7e   :  { %v1603_v1 = vmul.f32 %v2489_v0, %v2485_v44 }
 0xa80   :  { %2351 = vmatmul.mubr.msk.f32.vlgmr.msra.gmra.mrb[14].mxu1 %vm346_vm3, %v1603_v1 }
 0xa81   :  { %2413 = vmatpush3.bf16.msra.mxu1 %v2410_v62 }
 0xa82   :  { %2423 = vmatprep.subr.bf16.mxu1 %v2422_v36 }
 0xaba   :  { %v1676_v30 = vpop.f32.mrb[20].mxu0 }
 0xabb   :  { %v2347_v2 = vpop.f32.mrb[21].mxu0  ;;  %2357 = vmatprep.mubr.msk.f32.mxu1 %vm192_vm2, %v1676_v30  ;;  %v2183_v30 = vld [vmem:[%s2934_s11] ss:$0 sm:$0xff] }
 0xb53   :  { %v1752_v3 = vpop.f32.mrb[14].mxu1 }
 0xb54   :  { %v2352_v4 = vpop.f32.mrb[15].mxu1  ;;  %2358 = vmatmul.mubr.msk.f32.vlgmr.msra.gmra.mrb[4].mxu1 %vm192_vm2, %v1752_v3 }
 0xb55   :  { %2425 = vmatpush3.bf16.msra.mxu1 %v2422_v36 }
 0xb56   :  { %2427 = vmatprep.subr.bf16.mxu1 %v2426_v38 }
 0xb59   :  { %2429 = vmatpush3.bf16.msra.mxu1 %v2426_v38 }
 0xb5a   :  { %2431 = vmatprep.subr.bf16.mxu1 %v2430_v42 }
 0xb5d   :  { %2433 = vmatpush3.bf16.msra.mxu1 %v2430_v42 }
 0xb5e   :  { %2435 = vmatprep.subr.bf16.mxu1 %v2434_v59 }
 0xb61   :  { %2437 = vmatpush3.bf16.msra.mxu1 %v2434_v59 }
 0xc27   :  { %v2359_v6 = vpop.f32.mrb[4].mxu1 }
 0xc28   :  { %v2438_v8 = vadd.f32 %v2359_v6, %v2145_v5  ;;  %v1828_v29 = vpop.f32.mrb[5].mxu1 }
 0xc29   :  { %v2439_v9 = vadd.f32 %v2145_v5, %v1828_v29 }
 0xc2a   :  { %v1840_v10 = vadd.f32 %v2438_v8, %v2647_v14 }
 0xc2b   :  { %v1839_v11 = vadd.f32 %v2439_v9, %v2638_v13  ;;  %v1886_v13 = vld [vmem:[%s2931_s8] sm:$0xff] }
 0xc2c   :  { %v1844_v12 = vsel %vm76_vm0, %v1840_v10, 0.0  ;;  %v2414_v25 = vpack.c.bf16 %v1887_v23, %v1886_v13 }
 0xc2d   :  { %1845 = vadd.xlane.f32.xlu0 %v1844_v12  ;;  %v1841_v15 = vsel %vm76_vm0, %v1839_v11, 0.0 }
 0xc2e   :  { %1842 = vadd.xlane.f32.xlu1 %v1841_v15  ;;  %2415 = vmatprep.subr.bf16.mxu0 %v2414_v25 }
 0xc2f   :  { %2417 = vmatpush3.bf16.msra.mxu0 %v2414_v25 }
 0xc30   :  { %2419 = vmatprep.subr.bf16.mxu0 %v2418_v28 }
 0xc33   :  { %2421 = vmatpush3.bf16.msra.mxu0 %v2418_v28 }
 0xcba   :  { %v1846_v16 = vpop.xlane.xlu0 %1845 }
 0xcbb   :  { %v1849_v17 = vmul.f32 0.03125, %v1846_v16  ;;  %v1843_v18 = vpop.xlane.xlu1 %1842 }
 0xcbc   :  { %v1848_v19 = vmul.f32 0.03125, %v1843_v18 }
 0xcbd   :  { %v1851_v21 = vsub.f32 %v1840_v10, %v1849_v17 }
 0xcbe   :  { %v1850_v24 = vsub.f32 %v1839_v11, %v1848_v19 }
 0xcbf   :  { %v1853_v32 = vmul.f32 %v1851_v21, %v1851_v21 }
 0xcc0   :  { %v1852_v20 = vmul.f32 %v1850_v24, %v1850_v24 }
 0xcc1   :  { %v1857_v22 = vsel %vm76_vm0, %v1853_v32, 0.0 }
 0xcc2   :  { %1858 = vadd.xlane.f32.xlu1 %v1857_v22  ;;  %v1854_v14 = vsel %vm76_vm0, %v1852_v20, 0.0 }
 0xcc3   :  { %1855 = vadd.xlane.f32.xlu0 %v1854_v14 }
 0xd4f   :  { %v1859_v43 = vpop.xlane.xlu1 %1858 }
 0xd50   :  { %v1861_v45 = vmul.f32 0.03125, %v1859_v43  ;;  %v1856_v46 = vpop.xlane.xlu0 %1855 }
 0xd51   :  { %v1860_v47 = vmul.f32 0.03125, %v1856_v46 }
 0xd52   :  { %v1863_v48 = vadd.f32 1e-05, %v1861_v45 }
 0xd53   :  { %v1862_v49 = vadd.f32 1e-05, %v1860_v47 }
 0xd54   :  { %2490 = vrsqrt.f32 %v1863_v48 }
 0xd55   :  { %2492 = vrsqrt.f32 %v1862_v49 }
 0xd5e   :  { %v2491_v50 = vpop.eup %2490 }
 0xd5f   :  { %v2493_v39 = vpop.eup %2492  ;;  %v1867_v52 = vmul.f32 %v2491_v50, %v1851_v21 }
 0xd60   :  { %v1866_v7 = vmul.f32 %v2493_v39, %v1850_v24 }
 0xd61   :  { %v1876_v53 = vmul.f32 %v2178_v51, %v1867_v52 }
 0xd62   :  { %v1875_v55 = vmul.f32 %v2178_v51, %v1866_v7 }
 0xd63   :  { %v1885_v44 = vadd.f32 %v2179_v54, %v1876_v53 }
 0xd64   :  { %v1884_v56 = vadd.f32 %v2179_v54, %v1875_v55 }
 0xd66   :  { %2368 = vmatprep.mubr.msk.f32.mxu0 %vm76_vm0, %v1884_v56 }
 0xd67   :  { %2369 = vmatmul.mubr.msk.f32.vlgmr.msra.gmra.mrb[22].mxu0 %vm76_vm0, %v1885_v44 }
 0xe3a   :  { %v2370_v60 = vpop.f32.mrb[22].mxu0 }
 0xe3b   :  { %v1975_v61 = vadd.f32 %v2370_v60, %v2180_v33  ;;  %v1969_v62 = vpop.f32.mrb[23].mxu0 }
 0xe3c   :  { %v1970_v63 = vadd.f32 %v2180_v33, %v1969_v62 }
 0xe3d   :  { %v1979_v1 = vmax.f32 %v1975_v61, 0.0 }
 0xe3e   :  { %v1978_v0 = vmax.f32 %v1970_v63, 0.0 }
 0xe40   :  { %2387 = vmatprep.mubr.msk.f32.mxu1 %vm1995_vm4, %v1978_v0 }
 0xe41   :  { %2388 = vmatmul.mubr.msk.f32.vlgmr.msra.gmra.mrb[16].mxu1 %vm1995_vm4, %v1979_v1 }
 0xf14   :  { %v2389_v2 = vpop.f32.mrb[16].mxu1 }
 0xf15   :  { %v2074_v3 = vadd.f32 %v2389_v2, %v2183_v30  ;;  %v2068_v4 = vpop.f32.mrb[17].mxu1 }
 0xf16   :  { %v2069_v5 = vadd.f32 %v2183_v30, %v2068_v4 }
 0xf17   :  { %v2078_v6 = vadd.f32 %v2074_v3, %v1885_v44 }
 0xf18   :  { %v2077_v8 = vadd.f32 %v2069_v5, %v1884_v56 }
 0xf19   :  { %v2082_v29 = vsel %vm76_vm0, %v2078_v6, 0.0 }
 0xf1a   :  { %2083 = vadd.xlane.f32.xlu1 %v2082_v29  ;;  %v2079_v9 = vsel %vm76_vm0, %v2077_v8, 0.0 }
 0xf1b   :  { %2080 = vadd.xlane.f32.xlu0 %v2079_v9 }
 0xfa7   :  { %v2084_v10 = vpop.xlane.xlu1 %2083 }
 0xfa8   :  { %v2086_v11 = vmul.f32 0.03125, %v2084_v10  ;;  %v2081_v12 = vpop.xlane.xlu0 %2080 }
 0xfa9   :  { %v2085_v15 = vmul.f32 0.03125, %v2081_v12 }
 0xfaa   :  { %v2088_v16 = vsub.f32 %v2078_v6, %v2086_v11 }
 0xfab   :  { %v2087_v17 = vsub.f32 %v2077_v8, %v2085_v15 }
 0xfac   :  { %v2090_v18 = vmul.f32 %v2088_v16, %v2088_v16 }
 0xfad   :  { %v2089_v19 = vmul.f32 %v2087_v17, %v2087_v17 }
 0xfae   :  { %v2094_v21 = vsel %vm76_vm0, %v2090_v18, 0.0 }
 0xfaf   :  { %2095 = vadd.xlane.f32.xlu1 %v2094_v21  ;;  %v2091_v24 = vsel %vm76_vm0, %v2089_v19, 0.0 }
 0xfb0   :  { %2092 = vadd.xlane.f32.xlu0 %v2091_v24 }
0x103c   :  { %v2096_v32 = vpop.xlane.xlu1 %2095 }
0x103d   :  { %v2098_v20 = vmul.f32 0.03125, %v2096_v32  ;;  %v2093_v22 = vpop.xlane.xlu0 %2092 }
0x103e   :  { %v2097_v14 = vmul.f32 0.03125, %v2093_v22 }
0x103f   :  { %v2100_v13 = vadd.f32 1e-05, %v2098_v20 }
0x1040   :  { %v2099_v23 = vadd.f32 1e-05, %v2097_v14 }
0x1041   :  { %2494 = vrsqrt.f32 %v2100_v13 }
0x1042   :  { %2496 = vrsqrt.f32 %v2099_v23 }
0x104b   :  { %v2495_v25 = vpop.eup %2494 }
0x104c   :  { %v2497_v27 = vpop.eup %2496  ;;  %v2104_v28 = vmul.f32 %v2495_v25, %v2088_v16 }
0x104d   :  { %v2103_v31 = vmul.f32 %v2497_v27, %v2087_v17 }
0x104e   :  { %v2113_v35 = vmul.f32 %v2186_v26, %v2104_v28 }
0x104f   :  { %v2112_v36 = vmul.f32 %v2186_v26, %v2103_v31 }
0x1050   :  { %v2122_v37 = vadd.f32 %v2187_v34, %v2113_v35 }
0x1051   :  { %v2121_v38 = vadd.f32 %v2187_v34, %v2112_v36 }
0x1052   :  { %2124 = vst.msk [vmem:[#allocation2 + $0x8] sm:$0xff] %vm76_vm0, %v2122_v37 }
0x1053   :  { %2123 = vst.msk [vmem:[#allocation2] sm:$0xff] %vm76_vm0, %v2121_v38 }
0x1054   :  { %2509 = shalt.err (!%p2506_p4)
}
0x1055   :  { %s2510_s16 = scalar_lea.hbm %s2937_s14, 256 }
0x1056   :  { %p2511_p5 = scmp.ne.s32.totalorder %s2937_s14, %s2510_s16  ;;  %p2514_p6 = scmp.lt.u32.totalorder %s2510_s16, %s2937_s14 }
0x1058   :  { %p2516_p7 = pnand %p2514_p6, %p2511_p5 }
0x105a   :  { %2519 = shalt.err (!%p2516_p7)
}
0x105b   :  { %s2532_s18 = smov 128   ;;  %s2533_s19 = smov 8  }
0x105c   :  { %2136 = dma.vmem_to_hbm [thread:$0]  %s2131_s2, 256, %s2937_s14, [#allocation3], %s2532_s18, %s2532_s18, %s2533_s19  }
0x105d   :  { %2520 = dma.done.wait [#allocation3], 256  }
0x105e   :  { %2521 = vsyncadd [#allocation3], 4294967040 }
0x105f   :  { %2140 = vsyncpa [#allocation3], 1 }

</bundles_post_ra>
